<compile_context>
chip_gen: v7x
topology: tpu7x:2x2x1
jax: 0.10.0
libtpu: 0.0.40
codegen_flags: <defaults>
</compile_context>

<pallas_src>
import functools
import math

import jax
import jax.numpy as jnp
from jax.experimental import pallas as pl
from jax.experimental.pallas import tpu as pltpu


def _pick_heads_per_block(num_heads, head_dim, target=256):
    """Smallest head group whose projection width is lane-dense (>=target and a
    multiple of 128); falls back to all heads (full hidden dim, always a legal block)."""
    for hpb in range(1, num_heads):
        width = hpb * head_dim
        if num_heads % hpb == 0 and width >= target and width % 128 == 0:
            return hpb
    return num_heads


# ---------------------------------------------------------------------------
# Fused kernel: QKV projections + softmax attention + fused output projection.
# ---------------------------------------------------------------------------
def _attention_kernel(xq_ref, xk_ref, xv_ref,
                      wq_ref, bq_ref, wk_ref, bk_ref, wv_ref, bv_ref,
                      wp_ref, bp_ref,
                      attn_ref, out_ref,
                      acc_ref,
                      *, heads_per_block, head_dim):
    hb = pl.program_id(1)
    mm_dtype = xq_ref.dtype          # matmul operand dtype (bf16 on the fast path)

    @pl.when(hb == 0)
    def _init():
        acc_ref[...] = jnp.zeros_like(acc_ref)

    xq = xq_ref[0]                   # (Nq, Dq)
    xk = xk_ref[0]                   # (Nk, Dk)
    xv = xv_ref[0]                   # (Nk, Dk)

    # Lane-dense projections over the whole head block (width = heads_per_block*hd).
    # The 1/sqrt(hd) attention scale is already folded into wq/bq in the wrapper.
    q = jnp.dot(xq, wq_ref[...], preferred_element_type=jnp.float32) + bq_ref[...]
    k = jnp.dot(xk, wk_ref[...], preferred_element_type=jnp.float32) + bk_ref[...]
    v = jnp.dot(xv, wv_ref[...], preferred_element_type=jnp.float32) + bv_ref[...]

    ctx_parts = []
    for h in range(heads_per_block):            # static unroll over heads in the block
        lo, hi = h * head_dim, (h + 1) * head_dim
        qh = q[:, lo:hi].astype(mm_dtype)
        kh = k[:, lo:hi].astype(mm_dtype)
        vh = v[:, lo:hi].astype(mm_dtype)

        s = jnp.dot(qh, kh.T, preferred_element_type=jnp.float32)       # (Nq, Nk)
        s = s - jnp.max(s, axis=-1, keepdims=True)
        e = jnp.exp(s)
        # Exact divide kept because the attention weights are a checked output;
        # pl.reciprocal(denom, approx=True) is the EUP-cheap alternative.
        p = e / jnp.sum(e, axis=-1, keepdims=True)
        attn_ref[0, h] = p.astype(attn_ref.dtype)

        # TODO(synk): attention dropout omitted (module default dropout_prob=0.0 -> identity).
        ctx_parts.append(jnp.dot(p.astype(mm_dtype), vh,
                                 preferred_element_type=jnp.float32))    # (Nq, hd)

    ctx = jnp.concatenate(ctx_parts, axis=-1)                            # (Nq, hpb*hd)

    # Fused output projection: accumulate this head block's contribution into acc.
    acc_ref[...] += jnp.dot(ctx.astype(mm_dtype), wp_ref[...],
                            preferred_element_type=jnp.float32)

    @pl.when(hb == pl.num_programs(1) - 1)
    def _finalize():
        out_ref[0] = (acc_ref[...] + bp_ref[...]).astype(out_ref.dtype)


# ---------------------------------------------------------------------------
# Wrapper: mirrors Attention.forward (3-D and 4-D query paths, self/cross attn).
# ---------------------------------------------------------------------------
def attention_pallas(query, key=None, value=None, *, params, num_heads,
                     compute_dtype=None, heads_per_block=None,
                     vmem_limit_bytes=None):
    wq, bq, wk, bk, wv, bv, wp, bp = params
    if key is None:
        key = query
        value = query
    elif value is None:
        value = key

    orig_rank = query.ndim
    if orig_rank == 4:
        B0, N0, F0, _ = query.shape
        query = query.reshape(B0 * N0, F0, query.shape[-1])
        key = key.reshape(B0 * N0, F0, key.shape[-1])
        value = value.reshape(B0 * N0, F0, value.shape[-1])

    B, Nq, Dq = query.shape
    _, Nk, Dk = key.shape
    hidden = wq.shape[1]
    H = num_heads
    hd = hidden // H
    out_dtype = query.dtype

    if heads_per_block is None:
        heads_per_block = _pick_heads_per_block(H, hd)
    assert H % heads_per_block == 0
    HB = H // heads_per_block
    bw = heads_per_block * hd            # head-block width along the hidden dim

    # Fold the 1/sqrt(hd) attention scale into the query projection (free in-kernel).
    scale = 1.0 / math.sqrt(hd)
    wq = wq * scale
    bq = bq * scale

    if compute_dtype is not None:        # bf16 MXU operand fast path (f32 accumulation kept)
        query = query.astype(compute_dtype)
        key = key.astype(compute_dtype)
        value = value.astype(compute_dtype)
        wq, wk, wv, wp = (w.astype(compute_dtype) for w in (wq, wk, wv, wp))

    # Biases stay f32; (1, hidden) layout so head blocks are contiguous lane slices.
    bq2 = bq.astype(jnp.float32).reshape(1, hidden)
    bk2 = bk.astype(jnp.float32).reshape(1, hidden)
    bv2 = bv.astype(jnp.float32).reshape(1, hidden)
    bp2 = bp.astype(jnp.float32).reshape(1, hidden)

    kernel = functools.partial(_attention_kernel,
                               heads_per_block=heads_per_block, head_dim=hd)

    attn, out = pl.pallas_call(
        kernel,
        out_shape=(
            jax.ShapeDtypeStruct((B, H, Nq, Nk), out_dtype),    # attention weights
            jax.ShapeDtypeStruct((B, Nq, hidden), out_dtype),   # projected output (final layout)
        ),
        grid_spec=pltpu.PrefetchScalarGridSpec(
            num_scalar_prefetch=0,
            grid=(B, HB),
            in_specs=[
                pl.BlockSpec((1, Nq, Dq), lambda b, hb: (b, 0, 0)),   # query
                pl.BlockSpec((1, Nk, Dk), lambda b, hb: (b, 0, 0)),   # key
                pl.BlockSpec((1, Nk, Dk), lambda b, hb: (b, 0, 0)),   # value
                pl.BlockSpec((Dq, bw), lambda b, hb: (0, hb)),        # Wq head-block cols
                pl.BlockSpec((1, bw), lambda b, hb: (0, hb)),         # bq head-block cols
                pl.BlockSpec((Dk, bw), lambda b, hb: (0, hb)),        # Wk head-block cols
                pl.BlockSpec((1, bw), lambda b, hb: (0, hb)),         # bk head-block cols
                pl.BlockSpec((Dk, bw), lambda b, hb: (0, hb)),        # Wv head-block cols
                pl.BlockSpec((1, bw), lambda b, hb: (0, hb)),         # bv head-block cols
                pl.BlockSpec((bw, hidden), lambda b, hb: (hb, 0)),    # Wp head-block rows
                pl.BlockSpec((1, hidden), lambda b, hb: (0, 0)),      # bp
            ],
            out_specs=[
                pl.BlockSpec((1, heads_per_block, Nq, Nk), lambda b, hb: (b, hb, 0, 0)),
                pl.BlockSpec((1, Nq, hidden), lambda b, hb: (b, 0, 0)),
            ],
            scratch_shapes=[pltpu.VMEM((Nq, hidden), jnp.float32)],   # fused-proj accumulator
        ),
        compiler_params=pltpu.CompilerParams(
            dimension_semantics=("parallel", "arbitrary"),
            vmem_limit_bytes=vmem_limit_bytes),
    )(query, key, value, wq, bq2, wk, bk2, wv, bv2, wp, bp2)

    if orig_rank == 4:
        out = out.reshape(B0, N0, F0, hidden)
    return out, attn


# ---------------------------------------------------------------------------
# Parameter init (torch.nn.Linear-style) and a pure-JAX reference.
# ---------------------------------------------------------------------------
def init_attention_params(key, hidden_dim, num_heads, input_qdim=None, input_kdim=None):
    if input_qdim is None:
        input_qdim = hidden_dim
    if input_kdim is None:
        input_kdim = input_qdim
    ks = jax.random.split(key, 8)

    def linear(kw, kb, din, dout):
        bound = 1.0 / math.sqrt(din)
        w = jax.random.uniform(kw, (din, dout), jnp.float32, -bound, bound)
        b = jax.random.uniform(kb, (dout,), jnp.float32, -bound, bound)
        return w, b

    wq, bq = linear(ks[0], ks[1], input_qdim, hidden_dim)
    wk, bk = linear(ks[2], ks[3], input_kdim, hidden_dim)
    wv, bv = linear(ks[4], ks[5], input_kdim, hidden_dim)
    wp, bp = linear(ks[6], ks[7], hidden_dim, hidden_dim)
    return (wq, bq, wk, bk, wv, bv, wp, bp)


def attention_reference(query, key, value, params, num_heads):
    wq, bq, wk, bk, wv, bv, wp, bp = params
    B, Nq, _ = query.shape
    hidden = wq.shape[1]
    hd = hidden // num_heads
    hi = jax.lax.Precision.HIGHEST

    def split(x):
        return x.reshape(x.shape[0], x.shape[1], num_heads, hd).transpose(0, 2, 1, 3)

    Q = split(jnp.matmul(query, wq, precision=hi) + bq)
    K = split(jnp.matmul(key, wk, precision=hi) + bk)
    V = split(jnp.matmul(value, wv, precision=hi) + bv)
    s = jnp.einsum('bhqd,bhkd->bhqk', Q, K, precision=hi) / math.sqrt(hd)
    attn = jax.nn.softmax(s, axis=-1)
    o = jnp.einsum('bhqk,bhkd->bhqd', attn, V, precision=hi)
    o = o.transpose(0, 2, 1, 3).reshape(B, Nq, hidden)
    return jnp.matmul(o, wp, precision=hi) + bp, attn


if __name__ == "__main__":
    # Small shapes: batch=2, seq=8, hidden=32, num_heads=4 -> head_dim=8 (self-attention).
    B, N, NUM_HEADS, HIDDEN = 2, 8, 4, 32

    root = jax.random.PRNGKey(0)
    kx, kp, k4 = jax.random.split(root, 3)
    x = jax.random.normal(kx, (B, N, HIDDEN), jnp.float32)
    params = init_attention_params(kp, HIDDEN, NUM_HEADS)

    # 3-D self-attention path.
    out, attn = attention_pallas(x, params=params, num_heads=NUM_HEADS)
    jax.block_until_ready((out, attn))

    ref_out, ref_attn = attention_reference(x, x, x, params, NUM_HEADS)
    assert out.shape == (B, N, HIDDEN) and attn.shape == (B, NUM_HEADS, N, N)
    assert jnp.allclose(out, ref_out, atol=5e-3, rtol=5e-3), "output mismatch vs reference"
    assert jnp.allclose(attn, ref_attn, atol=2e-3, rtol=2e-3), "attention weights mismatch"

    # 4-D query path (B, N, F, D) -> flattened (B*N, F, D) attention.
    x4 = jax.random.normal(k4, (2, 2, N, HIDDEN), jnp.float32)
    out4, attn4 = attention_pallas(x4, params=params, num_heads=NUM_HEADS)
    jax.block_until_ready((out4, attn4))
    x4f = x4.reshape(4, N, HIDDEN)
    ref_out4, ref_attn4 = attention_reference(x4f, x4f, x4f, params, NUM_HEADS)
    assert out4.shape == (2, 2, N, HIDDEN) and attn4.shape == (4, NUM_HEADS, N, N)
    assert jnp.allclose(out4.reshape(4, N, HIDDEN), ref_out4, atol=5e-3, rtol=5e-3)
    assert jnp.allclose(attn4, ref_attn4, atol=2e-3, rtol=2e-3)

    print("KERNEL_OK")
</pallas_src>

<mosaic_0001>
module attributes {stable_mosaic.version = 11 : i64} {
  func.func @_attention_kernel(%arg0: i32, %arg1: i32, %arg2: memref<1x8x32xf32, #tpu.memory_space<vmem>>, %arg3: memref<1x8x32xf32, #tpu.memory_space<vmem>>, %arg4: memref<1x8x32xf32, #tpu.memory_space<vmem>>, %arg5: memref<32x32xf32, #tpu.memory_space<vmem>>, %arg6: memref<1x32xf32, #tpu.memory_space<vmem>>, %arg7: memref<32x32xf32, #tpu.memory_space<vmem>>, %arg8: memref<1x32xf32, #tpu.memory_space<vmem>>, %arg9: memref<32x32xf32, #tpu.memory_space<vmem>>, %arg10: memref<1x32xf32, #tpu.memory_space<vmem>>, %arg11: memref<32x32xf32, #tpu.memory_space<vmem>>, %arg12: memref<1x32xf32, #tpu.memory_space<vmem>>, %arg13: memref<1x4x8x8xf32, #tpu.memory_space<vmem>>, %arg14: memref<1x8x32xf32, #tpu.memory_space<vmem>>, %arg15: memref<8x32xf32, #tpu.memory_space<vmem>>) attributes {dimension_semantics = [#tpu.dimension_semantics<parallel>, #tpu.dimension_semantics<arbitrary>], iteration_bounds = array<i64: 2, 1>, scalar_prefetch = 0 : i64, scratch_operands = 1 : i64, tpu.core_type = #tpu.core_type<tc>, window_params = [{transform_indices = @transform_0, window_bounds = array<i64: 1, 8, 32>}, {transform_indices = @transform_1, window_bounds = array<i64: 1, 8, 32>}, {transform_indices = @transform_2, window_bounds = array<i64: 1, 8, 32>}, {transform_indices = @transform_3, window_bounds = array<i64: 32, 32>}, {transform_indices = @transform_4, window_bounds = array<i64: 1, 32>}, {transform_indices = @transform_5, window_bounds = array<i64: 32, 32>}, {transform_indices = @transform_6, window_bounds = array<i64: 1, 32>}, {transform_indices = @transform_7, window_bounds = array<i64: 32, 32>}, {transform_indices = @transform_8, window_bounds = array<i64: 1, 32>}, {transform_indices = @transform_9, window_bounds = array<i64: 32, 32>}, {pipeline_mode = #tpu.pipeline_mode<synchronous>, transform_indices = @transform_10, window_bounds = array<i64: 1, 32>}, {transform_indices = @transform_11, window_bounds = array<i64: 1, 4, 8, 8>}, {transform_indices = @transform_12, window_bounds = array<i64: 1, 8, 32>}]} {
    %c0_i32 = arith.constant 0 : i32
    %0 = arith.cmpi eq, %arg1, %c0_i32 : i32
    %1 = arith.extui %0 : i1 to i32
    %c0_i32_0 = arith.constant 0 : i32
    %2 = arith.cmpi ne, %1, %c0_i32_0 : i32
    scf.if %2 {
      %cst_61 = arith.constant 0.000000e+00 : f32
      %105 = vector.broadcast %cst_61 : f32 to vector<8x32xf32>
      %c0_62 = arith.constant 0 : index
      %c0_63 = arith.constant 0 : index
      %106 = vector.load %arg15[%c0_62, %c0_63] : memref<8x32xf32, #tpu.memory_space<vmem>>, vector<8x32xf32>
      tpu.vector_store %arg15[%c0_62, %c0_63], %105 {strides = array<i32>} : memref<8x32xf32, #tpu.memory_space<vmem>>, vector<8x32xf32>,
    } else {
    }
    %c0 = arith.constant 0 : index
    %c0_1 = arith.constant 0 : index
    %c0_2 = arith.constant 0 : index
    %3 = vector.load %arg2[%c0, %c0_1, %c0_2] : memref<1x8x32xf32, #tpu.memory_space<vmem>>, vector<1x8x32xf32>
    %4 = vector.shape_cast %3 : vector<1x8x32xf32> to vector<8x32xf32>
    %c0_3 = arith.constant 0 : index
    %c0_4 = arith.constant 0 : index
    %c0_5 = arith.constant 0 : index
    %5 = vector.load %arg3[%c0_3, %c0_4, %c0_5] : memref<1x8x32xf32, #tpu.memory_space<vmem>>, vector<1x8x32xf32>
    %6 = vector.shape_cast %5 : vector<1x8x32xf32> to vector<8x32xf32>
    %c0_6 = arith.constant 0 : index
    %c0_7 = arith.constant 0 : index
    %c0_8 = arith.constant 0 : index
    %7 = vector.load %arg4[%c0_6, %c0_7, %c0_8] : memref<1x8x32xf32, #tpu.memory_space<vmem>>, vector<1x8x32xf32>
    %8 = vector.shape_cast %7 : vector<1x8x32xf32> to vector<8x32xf32>
    %c0_9 = arith.constant 0 : index
    %c0_10 = arith.constant 0 : index
    %9 = vector.load %arg5[%c0_9, %c0_10] : memref<32x32xf32, #tpu.memory_space<vmem>>, vector<32x32xf32>
    %cst = arith.constant dense<0.000000e+00> : vector<8x32xf32>
    %10 = tpu.matmul %4, %9, %cst {dimension_numbers = #tpu.dot_dimension_numbers<[1], [0], [0], [1], [0, 0, 1, 1], [], []>} : vector<8x32xf32>, vector<32x32xf32>, vector<8x32xf32> -> vector<8x32xf32>
    %c0_11 = arith.constant 0 : index
    %c0_12 = arith.constant 0 : index
    %11 = vector.load %arg6[%c0_11, %c0_12] : memref<1x32xf32, #tpu.memory_space<vmem>>, vector<1x32xf32>
    %12 = vector.broadcast %11 : vector<1x32xf32> to vector<8x32xf32>
    %13 = arith.addf %10, %12 : vector<8x32xf32>
    %c0_13 = arith.constant 0 : index
    %c0_14 = arith.constant 0 : index
    %14 = vector.load %arg7[%c0_13, %c0_14] : memref<32x32xf32, #tpu.memory_space<vmem>>, vector<32x32xf32>
    %cst_15 = arith.constant dense<0.000000e+00> : vector<8x32xf32>
    %15 = tpu.matmul %6, %14, %cst_15 {dimension_numbers = #tpu.dot_dimension_numbers<[1], [0], [0], [1], [0, 0, 1, 1], [], []>} : vector<8x32xf32>, vector<32x32xf32>, vector<8x32xf32> -> vector<8x32xf32>
    %c0_16 = arith.constant 0 : index
    %c0_17 = arith.constant 0 : index
    %16 = vector.load %arg8[%c0_16, %c0_17] : memref<1x32xf32, #tpu.memory_space<vmem>>, vector<1x32xf32>
    %17 = vector.broadcast %16 : vector<1x32xf32> to vector<8x32xf32>
    %18 = arith.addf %15, %17 : vector<8x32xf32>
    %c0_18 = arith.constant 0 : index
    %c0_19 = arith.constant 0 : index
    %19 = vector.load %arg9[%c0_18, %c0_19] : memref<32x32xf32, #tpu.memory_space<vmem>>, vector<32x32xf32>
    %cst_20 = arith.constant dense<0.000000e+00> : vector<8x32xf32>
    %20 = tpu.matmul %8, %19, %cst_20 {dimension_numbers = #tpu.dot_dimension_numbers<[1], [0], [0], [1], [0, 0, 1, 1], [], []>} : vector<8x32xf32>, vector<32x32xf32>, vector<8x32xf32> -> vector<8x32xf32>
    %c0_21 = arith.constant 0 : index
    %c0_22 = arith.constant 0 : index
    %21 = vector.load %arg10[%c0_21, %c0_22] : memref<1x32xf32, #tpu.memory_space<vmem>>, vector<1x32xf32>
    %22 = vector.broadcast %21 : vector<1x32xf32> to vector<8x32xf32>
    %23 = arith.addf %20, %22 : vector<8x32xf32>
    %24 = vector.extract_strided_slice %13 {offsets = [0, 0], sizes = [8, 8], strides = [1, 1]} : vector<8x32xf32> to vector<8x8xf32>
    %25 = vector.extract_strided_slice %18 {offsets = [0, 0], sizes = [8, 8], strides = [1, 1]} : vector<8x32xf32> to vector<8x8xf32>
    %26 = vector.extract_strided_slice %23 {offsets = [0, 0], sizes = [8, 8], strides = [1, 1]} : vector<8x32xf32> to vector<8x8xf32>
    %27 = tpu.transpose %25, [1, 0] : vector<8x8xf32> -> vector<8x8xf32>
    %cst_23 = arith.constant dense<0.000000e+00> : vector<8x8xf32>
    %28 = tpu.matmul %24, %27, %cst_23 {dimension_numbers = #tpu.dot_dimension_numbers<[1], [0], [0], [1], [0, 0, 1, 1], [], []>} : vector<8x8xf32>, vector<8x8xf32>, vector<8x8xf32> -> vector<8x8xf32>
    %cst_24 = arith.constant dense<0xFF800000> : vector<8xf32>
    %29 = vector.multi_reduction <maximumf>, %28, %cst_24 [1] : vector<8x8xf32> to vector<8xf32>
    %30 = vector.shape_cast %29 : vector<8xf32> to vector<8x1xf32>
    %31 = vector.broadcast %30 : vector<8x1xf32> to vector<8x8xf32>
    %32 = arith.subf %28, %31 : vector<8x8xf32>
    %33 = math.exp %32 : vector<8x8xf32>
    %cst_25 = arith.constant dense<0.000000e+00> : vector<8xf32>
    %34 = vector.multi_reduction <add>, %33, %cst_25 [1] : vector<8x8xf32> to vector<8xf32>
    %35 = vector.shape_cast %34 : vector<8xf32> to vector<8x1xf32>
    %36 = vector.broadcast %35 : vector<8x1xf32> to vector<8x8xf32>
    %37 = arith.divf %33, %36 : vector<8x8xf32>
    %c0_26 = arith.constant 0 : index
    %c0_27 = arith.constant 0 : index
    %c0_28 = arith.constant 0 : index
    %c0_29 = arith.constant 0 : index
    %38 = vector.load %arg13[%c0_26, %c0_27, %c0_28, %c0_29] : memref<1x4x8x8xf32, #tpu.memory_space<vmem>>, vector<1x1x8x8xf32>
    %39 = vector.shape_cast %38 : vector<1x1x8x8xf32> to vector<8x8xf32>
    %40 = vector.shape_cast %37 : vector<8x8xf32> to vector<1x1x8x8xf32>
    tpu.vector_store %arg13[%c0_26, %c0_27, %c0_28, %c0_29], %40 {strides = array<i32>} : memref<1x4x8x8xf32, #tpu.memory_space<vmem>>, vector<1x1x8x8xf32>,
    %cst_30 = arith.constant dense<0.000000e+00> : vector<8x8xf32>
    %41 = tpu.matmul %37, %26, %cst_30 {dimension_numbers = #tpu.dot_dimension_numbers<[1], [0], [0], [1], [0, 0, 1, 1], [], []>} : vector<8x8xf32>, vector<8x8xf32>, vector<8x8xf32> -> vector<8x8xf32>
    %42 = vector.extract_strided_slice %13 {offsets = [0, 8], sizes = [8, 8], strides = [1, 1]} : vector<8x32xf32> to vector<8x8xf32>
    %43 = vector.extract_strided_slice %18 {offsets = [0, 8], sizes = [8, 8], strides = [1, 1]} : vector<8x32xf32> to vector<8x8xf32>
    %44 = vector.extract_strided_slice %23 {offsets = [0, 8], sizes = [8, 8], strides = [1, 1]} : vector<8x32xf32> to vector<8x8xf32>
    %45 = tpu.transpose %43, [1, 0] : vector<8x8xf32> -> vector<8x8xf32>
    %cst_31 = arith.constant dense<0.000000e+00> : vector<8x8xf32>
    %46 = tpu.matmul %42, %45, %cst_31 {dimension_numbers = #tpu.dot_dimension_numbers<[1], [0], [0], [1], [0, 0, 1, 1], [], []>} : vector<8x8xf32>, vector<8x8xf32>, vector<8x8xf32> -> vector<8x8xf32>
    %cst_32 = arith.constant dense<0xFF800000> : vector<8xf32>
    %47 = vector.multi_reduction <maximumf>, %46, %cst_32 [1] : vector<8x8xf32> to vector<8xf32>
    %48 = vector.shape_cast %47 : vector<8xf32> to vector<8x1xf32>
    %49 = vector.broadcast %48 : vector<8x1xf32> to vector<8x8xf32>
    %50 = arith.subf %46, %49 : vector<8x8xf32>
    %51 = math.exp %50 : vector<8x8xf32>
    %cst_33 = arith.constant dense<0.000000e+00> : vector<8xf32>
    %52 = vector.multi_reduction <add>, %51, %cst_33 [1] : vector<8x8xf32> to vector<8xf32>
    %53 = vector.shape_cast %52 : vector<8xf32> to vector<8x1xf32>
    %54 = vector.broadcast %53 : vector<8x1xf32> to vector<8x8xf32>
    %55 = arith.divf %51, %54 : vector<8x8xf32>
    %c0_34 = arith.constant 0 : index
    %c1 = arith.constant 1 : index
    %c0_35 = arith.constant 0 : index
    %c0_36 = arith.constant 0 : index
    %56 = vector.load %arg13[%c0_34, %c1, %c0_35, %c0_36] : memref<1x4x8x8xf32, #tpu.memory_space<vmem>>, vector<1x1x8x8xf32>
    %57 = vector.shape_cast %56 : vector<1x1x8x8xf32> to vector<8x8xf32>
    %58 = vector.shape_cast %55 : vector<8x8xf32> to vector<1x1x8x8xf32>
    tpu.vector_store %arg13[%c0_34, %c1, %c0_35, %c0_36], %58 {strides = array<i32>} : memref<1x4x8x8xf32, #tpu.memory_space<vmem>>, vector<1x1x8x8xf32>,
    %cst_37 = arith.constant dense<0.000000e+00> : vector<8x8xf32>
    %59 = tpu.matmul %55, %44, %cst_37 {dimension_numbers = #tpu.dot_dimension_numbers<[1], [0], [0], [1], [0, 0, 1, 1], [], []>} : vector<8x8xf32>, vector<8x8xf32>, vector<8x8xf32> -> vector<8x8xf32>
    %60 = vector.extract_strided_slice %13 {offsets = [0, 16], sizes = [8, 8], strides = [1, 1]} : vector<8x32xf32> to vector<8x8xf32>
    %61 = vector.extract_strided_slice %18 {offsets = [0, 16], sizes = [8, 8], strides = [1, 1]} : vector<8x32xf32> to vector<8x8xf32>
    %62 = vector.extract_strided_slice %23 {offsets = [0, 16], sizes = [8, 8], strides = [1, 1]} : vector<8x32xf32> to vector<8x8xf32>
    %63 = tpu.transpose %61, [1, 0] : vector<8x8xf32> -> vector<8x8xf32>
    %cst_38 = arith.constant dense<0.000000e+00> : vector<8x8xf32>
    %64 = tpu.matmul %60, %63, %cst_38 {dimension_numbers = #tpu.dot_dimension_numbers<[1], [0], [0], [1], [0, 0, 1, 1], [], []>} : vector<8x8xf32>, vector<8x8xf32>, vector<8x8xf32> -> vector<8x8xf32>
    %cst_39 = arith.constant dense<0xFF800000> : vector<8xf32>
    %65 = vector.multi_reduction <maximumf>, %64, %cst_39 [1] : vector<8x8xf32> to vector<8xf32>
    %66 = vector.shape_cast %65 : vector<8xf32> to vector<8x1xf32>
    %67 = vector.broadcast %66 : vector<8x1xf32> to vector<8x8xf32>
    %68 = arith.subf %64, %67 : vector<8x8xf32>
    %69 = math.exp %68 : vector<8x8xf32>
    %cst_40 = arith.constant dense<0.000000e+00> : vector<8xf32>
    %70 = vector.multi_reduction <add>, %69, %cst_40 [1] : vector<8x8xf32> to vector<8xf32>
    %71 = vector.shape_cast %70 : vector<8xf32> to vector<8x1xf32>
    %72 = vector.broadcast %71 : vector<8x1xf32> to vector<8x8xf32>
    %73 = arith.divf %69, %72 : vector<8x8xf32>
    %c0_41 = arith.constant 0 : index
    %c2 = arith.constant 2 : index
    %c0_42 = arith.constant 0 : index
    %c0_43 = arith.constant 0 : index
    %74 = vector.load %arg13[%c0_41, %c2, %c0_42, %c0_43] : memref<1x4x8x8xf32, #tpu.memory_space<vmem>>, vector<1x1x8x8xf32>
    %75 = vector.shape_cast %74 : vector<1x1x8x8xf32> to vector<8x8xf32>
    %76 = vector.shape_cast %73 : vector<8x8xf32> to vector<1x1x8x8xf32>
    tpu.vector_store %arg13[%c0_41, %c2, %c0_42, %c0_43], %76 {strides = array<i32>} : memref<1x4x8x8xf32, #tpu.memory_space<vmem>>, vector<1x1x8x8xf32>,
    %cst_44 = arith.constant dense<0.000000e+00> : vector<8x8xf32>
    %77 = tpu.matmul %73, %62, %cst_44 {dimension_numbers = #tpu.dot_dimension_numbers<[1], [0], [0], [1], [0, 0, 1, 1], [], []>} : vector<8x8xf32>, vector<8x8xf32>, vector<8x8xf32> -> vector<8x8xf32>
    %78 = vector.extract_strided_slice %13 {offsets = [0, 24], sizes = [8, 8], strides = [1, 1]} : vector<8x32xf32> to vector<8x8xf32>
    %79 = vector.extract_strided_slice %18 {offsets = [0, 24], sizes = [8, 8], strides = [1, 1]} : vector<8x32xf32> to vector<8x8xf32>
    %80 = vector.extract_strided_slice %23 {offsets = [0, 24], sizes = [8, 8], strides = [1, 1]} : vector<8x32xf32> to vector<8x8xf32>
    %81 = tpu.transpose %79, [1, 0] : vector<8x8xf32> -> vector<8x8xf32>
    %cst_45 = arith.constant dense<0.000000e+00> : vector<8x8xf32>
    %82 = tpu.matmul %78, %81, %cst_45 {dimension_numbers = #tpu.dot_dimension_numbers<[1], [0], [0], [1], [0, 0, 1, 1], [], []>} : vector<8x8xf32>, vector<8x8xf32>, vector<8x8xf32> -> vector<8x8xf32>
    %cst_46 = arith.constant dense<0xFF800000> : vector<8xf32>
    %83 = vector.multi_reduction <maximumf>, %82, %cst_46 [1] : vector<8x8xf32> to vector<8xf32>
    %84 = vector.shape_cast %83 : vector<8xf32> to vector<8x1xf32>
    %85 = vector.broadcast %84 : vector<8x1xf32> to vector<8x8xf32>
    %86 = arith.subf %82, %85 : vector<8x8xf32>
    %87 = math.exp %86 : vector<8x8xf32>
    %cst_47 = arith.constant dense<0.000000e+00> : vector<8xf32>
    %88 = vector.multi_reduction <add>, %87, %cst_47 [1] : vector<8x8xf32> to vector<8xf32>
    %89 = vector.shape_cast %88 : vector<8xf32> to vector<8x1xf32>
    %90 = vector.broadcast %89 : vector<8x1xf32> to vector<8x8xf32>
    %91 = arith.divf %87, %90 : vector<8x8xf32>
    %c0_48 = arith.constant 0 : index
    %c3 = arith.constant 3 : index
    %c0_49 = arith.constant 0 : index
    %c0_50 = arith.constant 0 : index
    %92 = vector.load %arg13[%c0_48, %c3, %c0_49, %c0_50] : memref<1x4x8x8xf32, #tpu.memory_space<vmem>>, vector<1x1x8x8xf32>
    %93 = vector.shape_cast %92 : vector<1x1x8x8xf32> to vector<8x8xf32>
    %94 = vector.shape_cast %91 : vector<8x8xf32> to vector<1x1x8x8xf32>
    tpu.vector_store %arg13[%c0_48, %c3, %c0_49, %c0_50], %94 {strides = array<i32>} : memref<1x4x8x8xf32, #tpu.memory_space<vmem>>, vector<1x1x8x8xf32>,
    %cst_51 = arith.constant dense<0.000000e+00> : vector<8x8xf32>
    %95 = tpu.matmul %91, %80, %cst_51 {dimension_numbers = #tpu.dot_dimension_numbers<[1], [0], [0], [1], [0, 0, 1, 1], [], []>} : vector<8x8xf32>, vector<8x8xf32>, vector<8x8xf32> -> vector<8x8xf32>
    %96 = tpu.concatenate %41, %59, %77, %95 in 1 : vector<8x8xf32>, vector<8x8xf32>, vector<8x8xf32>, vector<8x8xf32> -> vector<8x32xf32>
    %c0_52 = arith.constant 0 : index
    %c0_53 = arith.constant 0 : index
    %97 = vector.load %arg15[%c0_52, %c0_53] : memref<8x32xf32, #tpu.memory_space<vmem>>, vector<8x32xf32>
    %c0_54 = arith.constant 0 : index
    %c0_55 = arith.constant 0 : index
    %98 = vector.load %arg11[%c0_54, %c0_55] : memref<32x32xf32, #tpu.memory_space<vmem>>, vector<32x32xf32>
    %cst_56 = arith.constant dense<0.000000e+00> : vector<8x32xf32>
    %99 = tpu.matmul %96, %98, %cst_56 {dimension_numbers = #tpu.dot_dimension_numbers<[1], [0], [0], [1], [0, 0, 1, 1], [], []>} : vector<8x32xf32>, vector<32x32xf32>, vector<8x32xf32> -> vector<8x32xf32>
    %100 = arith.addf %97, %99 : vector<8x32xf32>
    %c0_57 = arith.constant 0 : index
    %c0_58 = arith.constant 0 : index
    %101 = vector.load %arg15[%c0_57, %c0_58] : memref<8x32xf32, #tpu.memory_space<vmem>>, vector<8x32xf32>
    tpu.vector_store %arg15[%c0_57, %c0_58], %100 {strides = array<i32>} : memref<8x32xf32, #tpu.memory_space<vmem>>, vector<8x32xf32>,
    %c0_i32_59 = arith.constant 0 : i32
    %102 = arith.cmpi eq, %arg1, %c0_i32_59 : i32
    %103 = arith.extui %102 : i1 to i32
    %c0_i32_60 = arith.constant 0 : i32
    %104 = arith.cmpi ne, %103, %c0_i32_60 : i32
    scf.if %104 {
      %c0_61 = arith.constant 0 : index
      %c0_62 = arith.constant 0 : index
      %105 = vector.load %arg15[%c0_61, %c0_62] : memref<8x32xf32, #tpu.memory_space<vmem>>, vector<8x32xf32>
      %c0_63 = arith.constant 0 : index
      %c0_64 = arith.constant 0 : index
      %106 = vector.load %arg12[%c0_63, %c0_64] : memref<1x32xf32, #tpu.memory_space<vmem>>, vector<1x32xf32>
      %107 = vector.broadcast %106 : vector<1x32xf32> to vector<8x32xf32>
      %108 = arith.addf %105, %107 : vector<8x32xf32>
      %c0_65 = arith.constant 0 : index
      %c0_66 = arith.constant 0 : index
      %c0_67 = arith.constant 0 : index
      %109 = vector.load %arg14[%c0_65, %c0_66, %c0_67] : memref<1x8x32xf32, #tpu.memory_space<vmem>>, vector<1x8x32xf32>
      %110 = vector.shape_cast %109 : vector<1x8x32xf32> to vector<8x32xf32>
      %111 = vector.shape_cast %108 : vector<8x32xf32> to vector<1x8x32xf32>
      tpu.vector_store %arg14[%c0_65, %c0_66, %c0_67], %111 {strides = array<i32>} : memref<1x8x32xf32, #tpu.memory_space<vmem>>, vector<1x8x32xf32>,
    } else {
    }
    return
  }
  func.func @transform_0(%arg0: i32, %arg1: i32) -> (i32, i32, i32) {
    %c0_i32 = arith.constant 0 : i32
    %c0_i32_0 = arith.constant 0 : i32
    %c0_i32_1 = arith.constant 0 : i32
    return %arg0, %c0_i32, %c0_i32_0 : i32, i32, i32
  }
  func.func @transform_1(%arg0: i32, %arg1: i32) -> (i32, i32, i32) {
    %c0_i32 = arith.constant 0 : i32
    %c0_i32_0 = arith.constant 0 : i32
    %c0_i32_1 = arith.constant 0 : i32
    return %arg0, %c0_i32, %c0_i32_0 : i32, i32, i32
  }
  func.func @transform_2(%arg0: i32, %arg1: i32) -> (i32, i32, i32) {
    %c0_i32 = arith.constant 0 : i32
    %c0_i32_0 = arith.constant 0 : i32
    %c0_i32_1 = arith.constant 0 : i32
    return %arg0, %c0_i32, %c0_i32_0 : i32, i32, i32
  }
  func.func @transform_3(%arg0: i32, %arg1: i32) -> (i32, i32) {
    %c0_i32 = arith.constant 0 : i32
    %c0_i32_0 = arith.constant 0 : i32
    return %c0_i32, %arg1 : i32, i32
  }
  func.func @transform_4(%arg0: i32, %arg1: i32) -> (i32, i32) {
    %c0_i32 = arith.constant 0 : i32
    %c0_i32_0 = arith.constant 0 : i32
    return %c0_i32, %arg1 : i32, i32
  }
  func.func @transform_5(%arg0: i32, %arg1: i32) -> (i32, i32) {
    %c0_i32 = arith.constant 0 : i32
    %c0_i32_0 = arith.constant 0 : i32
    return %c0_i32, %arg1 : i32, i32
  }
  func.func @transform_6(%arg0: i32, %arg1: i32) -> (i32, i32) {
    %c0_i32 = arith.constant 0 : i32
    %c0_i32_0 = arith.constant 0 : i32
    return %c0_i32, %arg1 : i32, i32
  }
  func.func @transform_7(%arg0: i32, %arg1: i32) -> (i32, i32) {
    %c0_i32 = arith.constant 0 : i32
    %c0_i32_0 = arith.constant 0 : i32
    return %c0_i32, %arg1 : i32, i32
  }
  func.func @transform_8(%arg0: i32, %arg1: i32) -> (i32, i32) {
    %c0_i32 = arith.constant 0 : i32
    %c0_i32_0 = arith.constant 0 : i32
    return %c0_i32, %arg1 : i32, i32
  }
  func.func @transform_9(%arg0: i32, %arg1: i32) -> (i32, i32) {
    %c0_i32 = arith.constant 0 : i32
    %c0_i32_0 = arith.constant 0 : i32
    return %arg1, %c0_i32 : i32, i32
  }
  func.func @transform_10(%arg0: i32, %arg1: i32) -> (i32, i32) {
    %c0_i32 = arith.constant 0 : i32
    %c0_i32_0 = arith.constant 0 : i32
    %c0_i32_1 = arith.constant 0 : i32
    return %c0_i32, %c0_i32_0 : i32, i32
  }
  func.func @transform_11(%arg0: i32, %arg1: i32) -> (i32, i32, i32, i32) {
    %c0_i32 = arith.constant 0 : i32
    %c0_i32_0 = arith.constant 0 : i32
    %c0_i32_1 = arith.constant 0 : i32
    return %arg0, %arg1, %c0_i32, %c0_i32_0 : i32, i32, i32, i32
  }
  func.func @transform_12(%arg0: i32, %arg1: i32) -> (i32, i32, i32) {
    %c0_i32 = arith.constant 0 : i32
    %c0_i32_0 = arith.constant 0 : i32
    %c0_i32_1 = arith.constant 0 : i32
    return %arg0, %c0_i32, %c0_i32_0 : i32, i32, i32
  }
}

</mosaic_0001>

<bundles_post_ra>
// kernel: tpu_custom_call.1
= control target key start
LH: loop header
LB: loop body
LE: loop exit
PB: predicated region body
PF: predicated region fallthrough
CT: control target
= control target key end

     0   :  { %s3277_s0 = inlined_call_operand.hbm [shape: f32[2,8,32], index: 0, kind: input, shape index: {}]   ;;  %s3278_s1 = inlined_call_operand.hbm [shape: f32[2,8,32], index: 1, kind: input, shape index: {}]   ;;  %s3279_s2 = inlined_call_operand.hbm [shape: f32[2,8,32], index: 2, kind: input, shape index: {}]   ;;  %s3280_s3 = inlined_call_operand.hbm [shape: f32[32,32], index: 3, kind: input, shape index: {}]   ;;  %s3281_s4 = inlined_call_operand.vmem [shape: f32[1,32], index: 4, kind: input, shape index: {}]   ;;  %s3282_s5 = inlined_call_operand.hbm [shape: f32[32,32], index: 5, kind: input, shape index: {}]   ;;  %s3283_s6 = inlined_call_operand.vmem [shape: f32[1,32], index: 6, kind: input, shape index: {}]   ;;  %s3284_s7 = inlined_call_operand.hbm [shape: f32[32,32], index: 7, kind: input, shape index: {}]   ;;  %s3285_s8 = inlined_call_operand.hbm [shape: f32[1,32], index: 8, kind: input, shape index: {}]   ;;  %s3286_s9 = inlined_call_operand.vmem [shape: f32[32,32], index: 9, kind: input, shape index: {}]   ;;  %s3287_s10 = inlined_call_operand.vmem [shape: f32[1,32], index: 10, kind: input, shape index: {}]   ;;  %s3288_s11 = inlined_call_operand.hbm [shape: f32[2,4,8,8], index: 11, kind: output, shape index: {0}]   ;;  %s3289_s12 = inlined_call_operand.hbm [shape: f32[2,8,32], index: 12, kind: output, shape index: {1}]  }
   0x1   :  { %3317 = sst [smem:[#allocation32_spill]] %s3278_s1 }
   0x2   :  { %3318 = sst [smem:[#allocation33_spill]] %s3280_s3 }
   0x3   :  { %3319 = sst [smem:[#allocation34_spill]] %s3284_s7 }
   0x4   :  { %3320 = sst [smem:[#allocation35_spill]] %s3286_s9 }
   0x5   :  { %3321 = sst [smem:[#allocation36_spill]] %s3287_s10 }
   0x6   :  { %3322 = sst [smem:[#allocation37_spill]] %s3288_s11 }
   0x7   :  { %3323 = sst [smem:[#allocation38_spill]] %s3289_s12 }
   0x8   :  { %18 = vsyncpa [#allocation4], 0 }
   0x9   :  { %20 = vsyncpa [#allocation4 + $0x1], 0 }
   0xa   :  { %21 = vsyncpa [#allocation7], 0 }
   0xb   :  { %23 = vsyncpa [#allocation7 + $0x1], 0 }
   0xc   :  { %24 = vsyncpa [#allocation10], 0 }
   0xd   :  { %25 = vsyncpa [#allocation13], 0 }
   0xe   :  { %26 = vsyncpa [#allocation5], 0 }
   0xf   :  { %28 = vsyncpa [#allocation5 + $0x1], 0 }
  0x10   :  { %29 = vsyncpa [#allocation17], 0 }
  0x11   :  { %31 = vsyncpa [#allocation17 + $0x1], 0  ;;  %s2738_s21 = smov 0   ;;  %s2740_s22 = smov 0  }
  0x12   :  { %s2742_s23 = smov 0   ;;  %s2744_s24 = smov 0  }
  0x13   :  { %s2746_s25 = smov 0   ;;  %s2748_s26 = smov 0  }
  0x14 LB: > { %3324 = sst [smem:[#allocation24_spill]] %s2630_s21  ;;  %s2769_s27 = sadd.s32 4294967295, %s2650_s26   ;;  %s2650_s26 = sphi %s2748_s26, %s37_s26   ;;  %s2646_s25 = sphi %s2746_s25, %s3372_s25   ;;  %s2642_s24 = sphi %s2744_s24, %s3371_s24   ;;  %s2638_s23 = sphi %s2742_s23, %s3375_s23   ;;  %s2634_s22 = sphi %s2740_s22, %s3374_s22   ;;  %s2630_s21 = sphi %s2738_s21, %s3373_s21  }
  0x15   : > { %3325 = sst [smem:[#allocation25_spill]] %s2642_s24  ;;  %p1976_p0 = scmp.ge.s32.totalorder %s2650_s26, 1 }
  0x16   : > { %3326 = sst [smem:[#allocation26_spill]] %s2646_s25  ;;  %p3301_p1 = scmp.eq.s32.totalorder %s2769_s27, 0 }
  0x17   : > { %3327 = sst [smem:[#allocation27_spill]] %s2650_s26  ;;  %p389_p2 = scmp.lt.s32.totalorder %s2650_s26, 3 }
  0x18   : > { %s2652_s29 = smov [#allocation9]   ;;  %s2653_s14 = smov [#allocation12]  }
  0x19   : > { %p2774_p3 = pnand %p1976_p0, %p389_p2  ;;  %s403_s30 = sshll.u32 %s2652_s29, 4  ;;  %s2778_s30 = int_to_ptr.vmem [resolvable:$true] %s403_s30 }
  0x1a   : > { %s445_s15 = sshll.u32 %s2653_s14, 4  ;;  %s3330_s3 = sld [smem:[#allocation33_spill]]  ;;  %s2789_s15 = int_to_ptr.vmem [resolvable:$true] %s445_s15 }
  0x1b   : > { %s3328_s28 = scalar_select %p2774_p3, 1, 0 }
  0x1c   : > { %p2202_p4 = pneg %p2774_p3 }
  0x1e   : > { %p2785_p6 = pnand %p2202_p4, %p3301_p1 }
  0x20   : > { %s3329_s13 = scalar_select %p2785_p6, 1, 0 }
  0x21   : > { %s2322_s18 = scalar_lea.hbm %s3330_s3, 512  ;;  %p2799_p8 = pneg %p2785_p6 }
  0x22   : > { %p2323_p7 = scmp.ne.s32.totalorder %s3330_s3, %s2322_s18  ;;  %p2329_p11 = scmp.lt.u32.totalorder %s2322_s18, %s3330_s3 }
  0x23   : > { %s3331_s29 = scalar_select %p2799_p8, 1, 0 }
  0x24   : > { %p2325_p9 = pnand %p2799_p8, %p2323_p7 }
  0x26   : > { %p2326_p10 = pneg %p2325_p9 }
  0x28   : > { %p2331_p12 = pnand %p2329_p11, %p2326_p10 }
  0x2a   : > { %2334 = shalt.err (!%p2331_p12)
}
  0x2b   : > { %s2335_s16 = scalar_lea.vmem %s2778_s30, 512  ;;  %p2343_p4 = scmp.lt.s32.totalorder %s2778_s30, %s2778_s30 }
  0x2c   : > { %p2336_p13 = scmp.ne.s32.totalorder %s2778_s30, %s2335_s16  ;;  %p2344_p5 = scmp.lt.s32.totalorder %s2335_s16, %s2335_s16 }
  0x2e   : > { %p2338_p0 = pnand %p2336_p13, %p2799_p8  ;;  %p2345_p7 = por %p2344_p5, %p2343_p4 }
  0x30   : > { %p2339_p2 = pneg %p2338_p0 }
  0x32   : > { %p2346_p9 = pnand %p2345_p7, %p2339_p2 }
  0x34   : > { %2349 = shalt.err (!%p2346_p9)
}
  0x35   : > { %s3294_s17 = smov 128   ;;  %s3295_s12 = smov 8  }
  0x36   : > { %2205 = dma.hbm_to_vmem [thread:$0]  (!%p2785_p6), %s3330_s3, 512, %s2778_s30, [#allocation10], %s3294_s17, %s3294_s17, %s3295_s12  }
  0x37   : > { %s3332_s7 = sld [smem:[#allocation34_spill]] }
  0x3d   : > { %s2350_s16 = scalar_lea.hbm %s3332_s7, 512 }
  0x3e   : > { %p2351_p5 = scmp.ne.s32.totalorder %s3332_s7, %s2350_s16  ;;  %p2357_p12 = scmp.lt.u32.totalorder %s2350_s16, %s3332_s7 }
  0x40   : > { %p2353_p10 = pnand %p2351_p5, %p2799_p8 }
  0x42   : > { %p2354_p11 = pneg %p2353_p10 }
  0x44   : > { %p2359_p13 = pnand %p2357_p12, %p2354_p11 }
  0x46   : > { %2362 = shalt.err (!%p2359_p13)
}
  0x47   : > { %s2363_s30 = scalar_lea.vmem %s2789_s15, 512  ;;  %p2371_p7 = scmp.lt.s32.totalorder %s2789_s15, %s2789_s15 }
  0x48   : > { %p2364_p0 = scmp.ne.s32.totalorder %s2789_s15, %s2363_s30  ;;  %p2372_p9 = scmp.lt.s32.totalorder %s2363_s30, %s2363_s30 }
  0x4a   : > { %p2366_p2 = pnand %p2364_p0, %p2799_p8  ;;  %p2373_p5 = por %p2372_p9, %p2371_p7 }
  0x4c   : > { %p2367_p4 = pneg %p2366_p2 }
  0x4e   : > { %p2374_p10 = pnand %p2373_p5, %p2367_p4 }
  0x50   : > { %2377 = shalt.err (!%p2374_p10)
}
  0x51   : > { %2211 = dma.hbm_to_vmem [thread:$0]  (!%p2785_p6), %s3332_s7, 512, %s2789_s15, [#allocation13], %s3294_s17, %s3294_s17, %s3295_s12  }
  0x52   : > { %s1975_s11 = sadd.s32 4294967294, %s2650_s26   ;;  %s49_s24 = sadd.s32 1, %s2646_s25 }
  0x53   : > { %p51_p11 = scmp.ge.s32.totalorder %s49_s24, 2  ;;  %s56_s18 = sadd.s32 1, %s2638_s23 }
  0x54   : > { %p63_p12 = scmp.ne.s32.totalorder %s2638_s23, %s2634_s22  ;;  %p64_p13 = scmp.eq.s32.totalorder %s2650_s26, 0 }
  0x55   : > { %s3377_s24 = smov (%p51_p11, %s49_s24), 0  ;;  %p69_p2 = scmp.ne.s32.totalorder %s2634_s22, %s2630_s21 }
  0x56   : > { %3333 = sst [smem:[#allocation28_spill]] %s3377_s24  ;;  %p2857_p0 = por %p64_p13, %p63_p12 }
  0x57   : > { %s53_s15 = ssub.s32 %s2646_s25, %s3377_s24  ;;  %p350_p4 = scmp.eq.s32.totalorder %s2769_s27, 1 }
  0x58   : > { %p54_p7 = scmp.eq.s32.totalorder %s53_s15, 0  ;;  %p2868_p9 = por %p3301_p1, %p69_p2 }
  0x59   : > { %p2872_p5 = por %p350_p4, %p63_p12  ;;  %p356_p10 = scmp.eq.s32.totalorder %s1975_s11, 1 }
  0x5a   : > { %s3335_s20 = scalar_select %p2868_p9, 1, 0 }
  0x5b   : > { %s3336_s14 = scalar_select %p2872_p5, 1, 0 }
  0x5c   : > { %s2877_s16 = scalar_select %p54_p7, %s2638_s23, %s56_s18  }
  0x5d   : > { %3337 = sst [smem:[#allocation29_spill]] %s3336_s14  ;;  %p2879_p11 = por %p356_p10, %p69_p2 }
  0x5e   : > { %3338 = sst [smem:[#allocation30_spill]] %s2877_s16  ;;  %p2236_p13 = scmp.lt.s32.totalorder %s2650_s26, 2 }
  0x5f   : > { %s3339_s30 = scalar_select %p2879_p11, 1, 0 }
  0x60   : > { %s3296_s9 = sand.u32 1, %s2638_s23   ;;  %s2886_s10 = sshll.u32 %s2646_s25, 7 }
  0x61   : > { %3340 = sst [smem:[#allocation31_spill]] %s3339_s30  ;;  %s2890_s15 = sshll.u32 %s3296_s9, 3 }
  0x62   : > { %p2894_p12 = pnand %p2236_p13, %p2857_p0  ;;  %s502_s11 = sand.u32 1, %s2650_s26  }
  0x63   : > { %s3342_s1 = sld [smem:[#allocation32_spill]]  ;;  %s506_s7 = scalar_lea.vmem [#allocation6], %s2890_s15 }
  0x64   : > { %s3341_s17 = scalar_select %p2894_p12, 1, 0 }
  0x65   : > { %s513_s9 = sshll.u32 %s506_s7, 4  ;;  %s2908_s19 = scalar_lea.sflag [#allocation7], %s502_s11  ;;  %s2906_s9 = int_to_ptr.vmem [resolvable:$true] %s513_s9 }
  0x66   : > { %p2914_p2 = pneg %p2894_p12 }
  0x68   : > { %s3343_s25 = scalar_select %p2914_p2, 1, 0 }
  0x69   : > { %s2903_s3 = scalar_lea.hbm %s3342_s1, %s2886_s10  ;;  %s2383_s16 = scalar_lea.hbm %s3342_s1, 256 }
  0x6a   : > { %s2378_s24 = scalar_lea.hbm %s2903_s3, 128  ;;  %p2384_p10 = scmp.lt.u32.totalorder %s2903_s3, %s3342_s1 }
  0x6b   : > { %p2379_p0 = scmp.ne.s32.totalorder %s2903_s3, %s2378_s24  ;;  %p2385_p13 = scmp.lt.u32.totalorder %s2383_s16, %s2378_s24 }
  0x6c   : > { %p2387_p11 = scmp.lt.u32.totalorder %s2378_s24, %s2903_s3 }
  0x6d   : > { %p2381_p4 = pnand %p2914_p2, %p2379_p0  ;;  %p2386_p1 = por %p2385_p13, %p2384_p10 }
  0x6f   : > { %p2382_p7 = pneg %p2381_p4  ;;  %p2388_p5 = por %p2387_p11, %p2386_p1 }
  0x71   : > { %p2389_p9 = pnand %p2388_p5, %p2382_p7 }
  0x73   : > { %2392 = shalt.err (!%p2389_p9)
}
  0x74   : > { %s2393_s11 = scalar_lea.vmem %s2906_s9, 128  ;;  %s2656_s12 = smov [#allocation6]  }
  0x75   : > { %p2394_p0 = scmp.ne.s32.totalorder %s2906_s9, %s2393_s11  ;;  %s2398_s18 = sshll.u32 %s2656_s12, 4  ;;  %s2399_s18 = int_to_ptr.vmem [resolvable:$false] %s2398_s18 }
  0x76   : > { %s2400_s26 = scalar_lea.vmem %s2399_s18, 256  ;;  %p2401_p6 = scmp.lt.s32.totalorder %s2906_s9, %s2399_s18 }
  0x77   : > { %p2396_p4 = pnand %p2394_p0, %p2914_p2  ;;  %p2402_p8 = scmp.lt.s32.totalorder %s2400_s26, %s2393_s11 }
  0x79   : > { %p2397_p3 = pneg %p2396_p4  ;;  %p2403_p10 = por %p2402_p8, %p2401_p6 }
  0x7b   : > { %p2404_p13 = pnand %p2403_p10, %p2397_p3 }
  0x7d   : > { %2407 = shalt.err (!%p2404_p13)
}
  0x7e   : > { %2221 = dma.hbm_to_vmem [thread:$0]  (!%p2894_p12), %s2903_s3, 128, %s2906_s9, %s2908_s19  }
  0x7f   : > { %s2657_s24 = smov [#allocation11]   ;;  %s2658_s7 = smov [#allocation14]  }
  0x80   : > { %s424_s16 = sshll.u32 %s2657_s24, 4  ;;  %s461_s1 = sshll.u32 %s2658_s7, 4  ;;  %s425_s16 = int_to_ptr.vmem [resolvable:$true] %s424_s16  ;;  %s462_s1 = int_to_ptr.vmem [resolvable:$true] %s461_s1 }
  0x81   : > { %s2408_s18 = scalar_lea.hbm %s3282_s5, 512  ;;  %p3344_p3 = scmp.ne.s32.totalorder %s3331_s29, 0 }
  0x82   : > { %p2409_p1 = scmp.ne.s32.totalorder %s3282_s5, %s2408_s18  ;;  %p2415_p9 = scmp.lt.u32.totalorder %s2408_s18, %s3282_s5 }
  0x84   : > { %p2411_p6 = pnand %p2409_p1, %p3344_p3 }
  0x86   : > { %p2412_p8 = pneg %p2411_p6 }
  0x88   : > { %p2417_p5 = pnand %p2415_p9, %p2412_p8 }
  0x8a   : > { %2420 = shalt.err (!%p2417_p5)
}
  0x8b   : > { %s2421_s3 = scalar_lea.vmem %s425_s16, 512  ;;  %p2429_p4 = scmp.lt.s32.totalorder %s425_s16, %s425_s16 }
  0x8c   : > { %p2422_p11 = scmp.ne.s32.totalorder %s425_s16, %s2421_s3  ;;  %p2430_p10 = scmp.lt.s32.totalorder %s2421_s3, %s2421_s3 }
  0x8e   : > { %p2424_p7 = pnand %p2422_p11, %p3344_p3  ;;  %p2431_p13 = por %p2430_p10, %p2429_p4 }
  0x90   : > { %p2425_p0 = pneg %p2424_p7 }
  0x92   : > { %p2432_p12 = pnand %p2431_p13, %p2425_p0 }
  0x94   : > { %2435 = shalt.err (!%p2432_p12)
}
  0x95   : > { %p3345_p1 = scmp.ne.s32.totalorder %s3329_s13, 0  ;;  %s3346_s30 = smov 8  }
  0x96   : > { %s3347_s9 = smov 128   ;;  %s2436_s12 = scalar_lea.hbm %s3285_s8, 16 }
  0x97   : > { %2208 = dma.hbm_to_vmem [thread:$0]  (!%p3345_p1), %s3282_s5, 512, %s425_s16, [#allocation10], %s3347_s9, %s3347_s9, %s3346_s30  }
  0x98   : > { %p2437_p6 = scmp.ne.s32.totalorder %s3285_s8, %s2436_s12  ;;  %p2443_p9 = scmp.lt.u32.totalorder %s2436_s12, %s3285_s8 }
  0x9a   : > { %p2439_p12 = pnand %p2437_p6, %p3344_p3 }
  0x9c   : > { %p2440_p8 = pneg %p2439_p12 }
  0x9e   : > { %p2445_p5 = pnand %p2443_p9, %p2440_p8 }
  0xa0   : > { %2448 = shalt.err (!%p2445_p5)
}
  0xa1   : > { %s2449_s21 = scalar_lea.vmem %s462_s1, 16  ;;  %s2456_s16 = scalar_lea.vmem %s462_s1, 32 }
  0xa2   : > { %p2450_p11 = scmp.ne.s32.totalorder %s462_s1, %s2449_s21  ;;  %p2457_p4 = scmp.lt.s32.totalorder %s462_s1, %s462_s1 }
  0xa3   : > { %p2458_p10 = scmp.lt.s32.totalorder %s2456_s16, %s2449_s21 }
  0xa4   : > { %p2452_p7 = pnand %p2450_p11, %p3344_p3 }
  0xa5   : > { %p2459_p13 = por %p2458_p10, %p2457_p4 }
  0xa6   : > { %p2453_p0 = pneg %p2452_p7 }
  0xa8   : > { %p2460_p2 = pnand %p2459_p13, %p2453_p0 }
  0xaa   : > { %2463 = shalt.err (!%p2460_p2)
}
  0xab   : > { %2214 = dma.hbm_to_vmem [thread:$0]  (!%p3345_p1), %s3285_s8, 16, %s462_s1, [#allocation13]  }
  0xac   : > { %s2981_s24 = scalar_lea.hbm %s3277_s0, %s2886_s10  ;;  %s488_s7 = scalar_lea.vmem [#allocation3], %s2890_s15 }
  0xad   : > { %s495_s13 = sshll.u32 %s488_s7, 4  ;;  %s2990_s11 = scalar_lea.hbm %s3279_s2, %s2886_s10  ;;  %s2984_s13 = int_to_ptr.vmem [resolvable:$true] %s495_s13 }
  0xae   : > { %s3348_s26 = sand.u32 1, %s2638_s23   ;;  %s2464_s3 = scalar_lea.hbm %s2981_s24, 128 }
  0xaf   : > { %s485_s1 = scalar_lea.sflag [#allocation4], %s3348_s26  ;;  %p2465_p2 = scmp.ne.s32.totalorder %s2981_s24, %s2464_s3 }
  0xb0   : > { %p3349_p3 = scmp.ne.s32.totalorder %s3343_s25, 0  ;;  %s2469_s30 = scalar_lea.hbm %s3277_s0, 256 }
  0xb1   : > { %p2470_p12 = scmp.lt.u32.totalorder %s2981_s24, %s3277_s0  ;;  %p2471_p8 = scmp.lt.u32.totalorder %s2469_s30, %s2464_s3 }
  0xb2   : > { %p2467_p1 = pnand %p2465_p2, %p3349_p3  ;;  %p2473_p5 = scmp.lt.u32.totalorder %s2464_s3, %s2981_s24 }
  0xb3   : > { %p2472_p9 = por %p2471_p8, %p2470_p12 }
  0xb4   : > { %p2468_p6 = pneg %p2467_p1 }
  0xb5   : > { %p2474_p11 = por %p2473_p5, %p2472_p9 }
  0xb7   : > { %p2475_p7 = pnand %p2474_p11, %p2468_p6 }
  0xb9   : > { %2478 = shalt.err (!%p2475_p7)
}
  0xba   : > { %s2479_s10 = scalar_lea.vmem %s2984_s13, 128  ;;  %s2659_s14 = smov [#allocation3]  }
  0xbb   : > { %p2480_p0 = scmp.ne.s32.totalorder %s2984_s13, %s2479_s10  ;;  %s2484_s7 = sshll.u32 %s2659_s14, 4  ;;  %s2485_s7 = int_to_ptr.vmem [resolvable:$false] %s2484_s7 }
  0xbc   : > { %s2486_s12 = scalar_lea.vmem %s2485_s7, 256  ;;  %p2487_p13 = scmp.lt.s32.totalorder %s2984_s13, %s2485_s7 }
  0xbd   : > { %p2482_p4 = pnand %p2480_p0, %p3349_p3  ;;  %p2488_p2 = scmp.lt.s32.totalorder %s2486_s12, %s2479_s10 }
  0xbf   : > { %p2483_p10 = pneg %p2482_p4  ;;  %p2489_p1 = por %p2488_p2, %p2487_p13 }
  0xc1   : > { %p2490_p12 = pnand %p2489_p1, %p2483_p10 }
  0xc3   : > { %2493 = shalt.err (!%p2490_p12)
}
  0xc4   : > { %p3350_p6 = scmp.ne.s32.totalorder %s3341_s17, 0  ;;  %s524_s18 = scalar_lea.vmem [#allocation8], %s2890_s15 }
  0xc5   : > { %s531_s26 = sshll.u32 %s524_s18, 4  ;;  %s2494_s3 = scalar_lea.hbm %s2990_s11, 128  ;;  %s532_s26 = int_to_ptr.vmem [resolvable:$true] %s531_s26 }
  0xc6   : > { %2218 = dma.hbm_to_vmem [thread:$0]  (!%p3350_p6), %s2981_s24, 128, %s2984_s13, %s485_s1  }
  0xc7   : > { %p2495_p8 = scmp.ne.s32.totalorder %s2990_s11, %s2494_s3  ;;  %s2499_s30 = scalar_lea.hbm %s3279_s2, 256 }
  0xc8   : > { %p2500_p11 = scmp.lt.u32.totalorder %s2990_s11, %s3279_s2  ;;  %p2501_p7 = scmp.lt.u32.totalorder %s2499_s30, %s2494_s3 }
  0xc9   : > { %p2497_p9 = pnand %p2495_p8, %p3349_p3  ;;  %p2503_p4 = scmp.lt.u32.totalorder %s2494_s3, %s2990_s11 }
  0xca   : > { %p2502_p0 = por %p2501_p7, %p2500_p11 }
  0xcb   : > { %p2498_p5 = pneg %p2497_p9 }
  0xcc   : > { %p2504_p10 = por %p2503_p4, %p2502_p0 }
  0xce   : > { %p2505_p13 = pnand %p2504_p10, %p2498_p5 }
  0xd0   : > { %2508 = shalt.err (!%p2505_p13)
}
  0xd1   : > { %s2509_s15 = scalar_lea.vmem %s532_s26, 128  ;;  %s2660_s24 = smov [#allocation8]  }
  0xd2   : > { %p2510_p2 = scmp.ne.s32.totalorder %s532_s26, %s2509_s15  ;;  %s2514_s13 = sshll.u32 %s2660_s24, 4  ;;  %s2515_s13 = int_to_ptr.vmem [resolvable:$false] %s2514_s13 }
  0xd3   : > { %s2516_s1 = scalar_lea.vmem %s2515_s13, 256  ;;  %p2517_p8 = scmp.lt.s32.totalorder %s532_s26, %s2515_s13 }
  0xd4   : > { %p2512_p1 = pnand %p2510_p2, %p3349_p3  ;;  %p2518_p9 = scmp.lt.s32.totalorder %s2516_s1, %s2509_s15 }
  0xd6   : > { %p2513_p12 = pneg %p2512_p1  ;;  %p2519_p6 = por %p2518_p9, %p2517_p8 }
  0xd8   : > { %p2520_p7 = pnand %p2519_p6, %p2513_p12 }
  0xda   : > { %2523 = shalt.err (!%p2520_p7)
}
  0xdb   : > { %p3351_p11 = scmp.ne.s32.totalorder %s3341_s17, 0  ;;  %p3352_p5 = scmp.ne.s32.totalorder %s3328_s28, 0 }
  0xdc   : > { %s3037_s25 = sand.u32 (!%p3352_p5), 1, %s2634_s22   ;;  %p3353_p3 = scmp.ne.s32.totalorder (!%p3352_p5), %s3335_s20, 0 }
  0xdd   : > { %2224 = dma.hbm_to_vmem [thread:$0]  (!%p3351_p11), %s2990_s11, 128, %s532_s26, %s2908_s19  }
  0xde   : > { %540 = sbr.rel (%p3352_p5) target bundleno = 2155 (0x86b), region = 64  ;;  %s3040_s10 = sshll.u32 (!%p3352_p5), %s3037_s25, 3 }
  0xdf   : > { %s543_s14 = scalar_lea.sflag (!%p3352_p5), [#allocation4], %s3037_s25  ;;  %s546_s7 = scalar_lea.vmem (!%p3352_p5), [#allocation3], %s3040_s10 }
  0xe5   : > { %2605 = dma.done.wait (%p3353_p3), %s543_s14, 128  }
  0xe6   : > { %2607 = vsyncadd (%p3353_p3), %s543_s14, 4294967168  ;;  %s551_s28 = sand.u32 1, %s2769_s27   ;;  %s555_s19 = scalar_lea.vmem [#allocation6], %s3040_s10 }
  0xe7   : > { %s552_s17 = scalar_lea.sflag [#allocation7], %s551_s28 }
  0xe8   : > { %2609 = dma.done.wait (%p3353_p3), %s552_s17, 256  }
  0xe9   : > { %2611 = vsyncadd (%p3353_p3), %s552_s17, 4294967040  ;;  %s564_s11 = scalar_lea.vmem [#allocation8], %s3040_s10  ;;  %p3354_p6 = scmp.eq.s32.totalorder %s2769_s27, 0 }
  0xeb   : > { %2613 = dma.done.wait (%p3354_p6), [#allocation10], 1024   ;;  %p3355_p0 = pmov %p3354_p6 }
  0xed   : > { %2615 = vsyncadd (%p3355_p0), [#allocation10], 4294966272  ;;  %p3356_p4 = pmov %p3355_p0 }
  0xee   : > { %p3357_p10 = pmov %p3355_p0 }
  0xef   : > { %2617 = dma.done.wait (%p3356_p4), [#allocation13], 528  }
  0xf0   : > { %2619 = vsyncadd (%p3357_p10), [#allocation13], 4294966768  ;;  %vm664_vm0 = vcmask 261120   ;;  %v2661_v0 = vmov 0.0|0.0   ;;  %v2662_v1 = vmov 0.0   ;;  %vm2663_vm1 = vmmov 0  }
  0xf1   : > { %2158 = vmatprep.subr.bf16.mxu1 %v2661_v0  ;;  %2152 = vmatprep.subr.bf16.mxu0 %v2661_v0  ;;  %665 = vst.msk [vmem:[#allocation2] sm:$0xff] %vm664_vm0, %v2662_v1  ;;  %v754_v2 = vld [vmem:[#allocation11] sm:$0xff]  ;;  %v755_v3 = vld [vmem:[#allocation11 + $0x8] sm:$0xff]  ;;  %v756_v7 = vld [vmem:[#allocation11 + $0x10] sm:$0xff]  ;;  %vm922_vm2 = vcmask 64512   ;;  %s2664_s26 = smov 120  }
  0xf2   : > { %2087 = vmatprep.mubr.msk.f32.mxu1 %vm2663_vm1, %v2662_v1  ;;  %2076 = vmatprep.mubr.msk.f32.mxu0 %vm2663_vm1, %v2662_v1  ;;  %v669_v4 = vld [vmem:[#allocation9] sm:$0xff]  ;;  %v2159_v5 = vpack.c.bf16 %v755_v3, %v754_v2  ;;  %v670_v6 = vld [vmem:[#allocation9 + $0x8] sm:$0xff]  ;;  %v757_v8 = vld [vmem:[#allocation11 + $0x18] sm:$0xff]  ;;  %s2665_s3 = smov 112   ;;  %s2666_s21 = smov 104   ;;  %vm1599_vm3 = vcmask 130048  }
  0xf3   : > { %v2153_v9 = vpack.c.bf16 %v670_v6, %v669_v4  ;;  %v671_v10 = vld [vmem:[#allocation9 + $0x10] sm:$0xff]  ;;  %v672_v11 = vld [vmem:[#allocation9 + $0x18] sm:$0xff]  ;;  %v2162_v12 = vpack.c.bf16 %v757_v8, %v756_v7  ;;  %v667_v14 = vld [vmem:[%s555_s19] sm:$0xff]  ;;  %s1999_s16 = sshll.u32 %s3037_s25, 5  ;;  %s3358_s15 = sld [smem:[#allocation35_spill]]  ;;  %vm1601_vm4 = vcmask 195584  }
  0xf4   : > { %2160 = vmatpush3.bf16.msra.mxu1 %v2159_v5  ;;  %v2156_v13 = vpack.c.bf16 %v672_v11, %v671_v10  ;;  %v666_v15 = vld [vmem:[%s546_s7] sm:$0xff]  ;;  %v2003_v16 = vld [vmem:[%s3283_s6] ss:$0 sm:$0xff]  ;;  %v838_v24 = vld [vmem:[#allocation12] sm:$0xff]  ;;  %s3126_s30 = scalar_lea.vmem [#allocation15], %s1999_s16  ;;  %s2667_s17 = smov 8  }
  0xf5   : > { %2154 = vmatpush3.bf16.msra.mxu0 %v2153_v9  ;;  %2161 = vmatprep.subr.bf16.mxu1 %v2661_v0  ;;  %v2001_v17 = vld [vmem:[%s3281_s4] ss:$0 sm:$0xff]  ;;  %v840_v26 = vld [vmem:[#allocation12 + $0x10] sm:$0xff]  ;;  %v841_v28 = vld [vmem:[#allocation12 + $0x18] sm:$0xff]  ;;  %s2668_s19 = smov 16   ;;  %s2669_s27 = smov 24  }
  0xf6   : > { %2155 = vmatprep.subr.bf16.mxu0 %v2661_v0  ;;  %v839_v25 = vld [vmem:[#allocation12 + $0x8] sm:$0xff]  ;;  %v2168_v29 = vpack.c.bf16 %v841_v28, %v840_v26  ;;  %v668_v30 = vld [vmem:[%s564_s11] sm:$0xff]  ;;  %v2005_v39 = vld [vmem:[#allocation14] ss:$0 sm:$0xff]  ;;  %s3359_s11 = sld [smem:[#allocation25_spill]]  ;;  %s3360_s20 = sld [smem:[#allocation29_spill]] }
  0xf7   : > { %v2165_v27 = vpack.c.bf16 %v839_v25, %v838_v24  ;;  %s1717_s16 = sshll.u32 %s3126_s30, 4  ;;  %s1697_s9 = scalar_lea.sflag [#allocation5], %s3037_s25  ;;  %s3191_s16 = int_to_ptr.vmem [resolvable:$true] %s1717_s16 }
  0xf8   : > { %2163 = vmatpush3.bf16.msra.mxu1 %v2162_v12  ;;  %s2524_s29 = scalar_lea.vmem %s3191_s16, 512  ;;  %s2670_s24 = smov [#allocation15]  }
  0xf9   : > { %2157 = vmatpush3.bf16.msra.mxu0 %v2156_v13  ;;  %2101 = vmatprep.subr.mxu1 %v2662_v1  ;;  %v1604_v28 = vld [vmem:[%s3358_s15] sm:$0xff]  ;;  %p2525_p13 = scmp.ne.s32.totalorder %s3191_s16, %s2524_s29  ;;  %s2528_s13 = sshll.u32 %s2670_s24, 4  ;;  %s2529_s13 = int_to_ptr.vmem [resolvable:$false] %s2528_s13 }
  0xfa   : > { %2164 = vmatprep.subr.bf16.mxu0 %v2661_v0  ;;  %s2530_s1 = scalar_lea.vmem %s2529_s13, 1024  ;;  %p2531_p8 = scmp.lt.s32.totalorder %s3191_s16, %s2529_s13 }
  0xfb   : > { %2088 = vmatmul.mubr.msk.f32.vlgmr.msra.gmra.mrb[0].mxu1 %vm664_vm0, %v667_v14  ;;  %p2532_p9 = scmp.lt.s32.totalorder %s2530_s1, %s2524_s29 }
  0xfc   : > { %2077 = vmatmul.mubr.msk.f32.vlgmr.msra.gmra.mrb[0].mxu0 %vm664_vm0, %v666_v15  ;;  %2103 = vmatprep.mubr.msk.f32.mxu1 %vm2663_vm1, %v2662_v1  ;;  %s2031_s12 = sshll.u32 %s3359_s11, 9  ;;  %p3362_p2 = scmp.ne.s32.totalorder %s3360_s20, 0 }
  0xfd   : > { %2098 = vmatprep.mubr.msk.f32.mxu0 %vm2663_vm1, %v2662_v1  ;;  %2166 = vmatpush3.bf16.msra.mxu0 %v2165_v27  ;;  %p2533_p7 = por %p2532_p9, %p2531_p8 }
  0xfe   : > { %2167 = vmatprep.subr.bf16.mxu0 %v2661_v0  ;;  %p2526_p1 = pnand %p2525_p13, %p3362_p2 }
 0x100   : > { %p2527_p12 = pneg %p2526_p1 }
 0x101   : > { %2169 = vmatpush3.bf16.msra.mxu0 %v2168_v29  ;;  %v1605_v29 = vld [vmem:[%s3358_s15 + $0x8] sm:$0xff] }
 0x102   : > { %2121 = vmatprep.subr.mxu0 %v2662_v1  ;;  %p2534_p11 = pnand %p2533_p7, %p2527_p12 }
 0x104   : > { %2099 = vmatmul.mubr.msk.f32.vlgmr.msra.gmra.mrb[2].mxu0 %vm664_vm0, %v668_v30  ;;  %v2171_v30 = vpack.c.bf16 %v1605_v29, %v1604_v28 }
 0x105   : > { %2123 = vmatprep.mubr.msk.f32.mxu0 %vm2663_vm1, %v2662_v1 }
 0x1ce   : > { %v834_v18 = vpop.f32.mrb[0].mxu1 }
 0x1cf   : > { %v835_v19 = vadd.f32 %v2003_v16, %v834_v18  ;;  %v2089_v20 = vpop.f32.mrb[1].mxu1  ;;  %v750_v21 = vpop.f32.mrb[0].mxu0 }
 0x1d0   : > { %v751_v22 = vadd.f32 %v2001_v17, %v750_v21  ;;  %v2078_v23 = vpop.f32.mrb[1].mxu0 }
 0x1d1   : > { %1086 = vrot.lane.b32.xlu1 %v835_v19, %s2664_s26  ;;  %2102 = vmatpush3.xpose.msk.msra.mxu1 %vm922_vm2, %v835_v19 }
 0x1d2   : > { %2106 = vmatprep.subr.mxu1 %v2662_v1 }
 0x1d4   : > { %2104 = vmatmul.mubr.msk.f32.vlgmr.msra.gmra.mrb[2].mxu1 %vm922_vm2, %v751_v22 }
 0x1d5   : > { %1084 = vrot.lane.b32.xlu1 %v751_v22, %s2664_s26  ;;  %2108 = vmatprep.mubr.msk.f32.mxu1 %vm2663_vm1, %v2662_v1 }
 0x1d7   : > { %v918_v40 = vpop.f32.mrb[2].mxu0 }
 0x1d8   : > { %v3110_v41 = vadd.f32 %v2005_v39, %v918_v40  ;;  %v2100_v42 = vpop.f32.mrb[3].mxu0 }
 0x1d9   : > { %1252 = vrot.lane.b32.xlu1 %v751_v22, %s2665_s3 }
 0x1da   : > { %2107 = vmatpush3.msra.mxu1 %v3110_v41 }
 0x1db   : > { %2111 = vmatprep.subr.mxu1 %v2662_v1 }
 0x1dd   : > { %1421 = vrot.lane.b32.xlu1 %v835_v19, %s2666_s21 }
 0x1e1   : > { %1419 = vrot.lane.b32.xlu1 %v751_v22, %s2666_s21 }
 0x243   : > { %v1087_v43 = vpop.permute.xlu1 %1086 }
 0x247   : > { %v1085_v44 = vpop.permute.xlu1 %1084 }
 0x24b   : > { %v1253_v45 = vpop.permute.xlu1 %1252 }
 0x24f   : > { %v1422_v48 = vpop.permute.xlu1 %1421 }
 0x253   : > { %v1420_v50 = vpop.permute.xlu1 %1419 }
 0x2a7   : > { %v995_v31 = vpop.f32.mrb[2].mxu1 }
 0x2a8   : > { %v2105_v32 = vpop.f32.mrb[3].mxu1  ;;  %v999_v33 = vsel %vm922_vm2, %v995_v31, -inf }
 0x2a9   : > { %1000 = vmax.xlane.f32.xlu0 %v999_v33 }
 0x336   : > { %v1001_v34 = vpop.xlane.xlu0 %1000 }
 0x337   : > { %v1002_v35 = vsub.f32 %v995_v31, %v1001_v34  ;;  %v1606_v31 = vld [vmem:[%s3358_s15 + $0x10] sm:$0xff] }
 0x339   : > { %v1003_v36 = vmul.f32 1.442695, %v1002_v35 }
 0x33b   : > { %2306 = vpow2.f32 %v1003_v36 }
 0x345   : > { %v2307_v37 = vpop.eup %2306 }
 0x346   : > { %v1005_v38 = vsel %vm922_vm2, %v2307_v37, 0.0 }
 0x347   : > { %1006 = vadd.xlane.f32.xlu0 %v1005_v38 }
 0x35d   : > { %1254 = vrot.lane.b32.xlu0 %v835_v19, %s2665_s3 }
 0x3d4   : > { %v1007_v46 = vpop.xlane.xlu0 %1006 }
 0x3d5   : > { %2308 = vrcp.f32 %v1007_v46 }
 0x3d8   : > { %v1255_v47 = vpop.permute.xlu0 %1254 }
 0x3d9   : > { %2122 = vmatpush3.xpose.msk.msra.mxu0 %vm922_vm2, %v1255_v47 }
 0x3da   : > { %2131 = vmatprep.subr.mxu0 %v2662_v1 }
 0x3dc   : > { %2124 = vmatmul.mubr.msk.f32.vlgmr.msra.gmra.mrb[4].mxu0 %vm922_vm2, %v1253_v45 }
 0x3dd   : > { %2132 = vmatpush3.xpose.msk.msra.mxu0 %vm922_vm2, %v1422_v48  ;;  %2133 = vmatprep.mubr.msk.f32.mxu0 %vm2663_vm1, %v2662_v1 }
 0x3de   : > { %2170 = vmatprep.subr.bf16.mxu0 %v2661_v0 }
 0x3df   : > { %v2309_v49 = vpop.eup %2308 }
 0x3e0   : > { %v1009_v51 = vmul.f32 %v2309_v49, %v2307_v37  ;;  %2134 = vmatmul.mubr.msk.f32.vlgmr.msra.gmra.mrb[6].mxu0 %vm922_vm2, %v1420_v50 }
 0x3e1   : > { %2149 = vmatprep.mubr.msk.f32.mxu0 %vm2663_vm1, %v2662_v1  ;;  %2172 = vmatpush3.bf16.msra.mxu0 %v2171_v30 }
 0x3e2   : > { %1010 = vst.msk [vmem:[%s3126_s30] sm:$0xff] %vm922_vm2, %v1009_v51  ;;  %2109 = vmatmul.mubr.msk.f32.vlgmr.msra.gmra.mrb[4].mxu1 %vm922_vm2, %v1009_v51  ;;  %2173 = vmatprep.subr.bf16.mxu0 %v2661_v0 }
 0x3e3   : > { %2112 = vmatpush3.xpose.msk.msra.mxu1 %vm922_vm2, %v1087_v43  ;;  %2113 = vmatprep.mubr.msk.f32.mxu1 %vm2663_vm1, %v2662_v1 }
 0x3e4   : > { %2116 = vmatprep.subr.mxu1 %v2662_v1 }
 0x3e6   : > { %2114 = vmatmul.mubr.msk.f32.vlgmr.msra.gmra.mrb[6].mxu1 %vm922_vm2, %v1085_v44 }
 0x3e7   : > { %2118 = vmatprep.mubr.msk.f32.mxu1 %vm2663_vm1, %v2662_v1 }
 0x4af   : > { %v1326_v52 = vpop.f32.mrb[4].mxu0 }
 0x4b0   : > { %v2125_v53 = vpop.f32.mrb[5].mxu0  ;;  %v1330_v54 = vsel %vm922_vm2, %v1326_v52, -inf }
 0x4b1   : > { %1331 = vmax.xlane.f32.xlu0 %v1330_v54 }
 0x4b3   : > { %v1493_v55 = vpop.f32.mrb[6].mxu0 }
 0x4b4   : > { %v2135_v56 = vpop.f32.mrb[7].mxu0  ;;  %v1497_v62 = vsel %vm922_vm2, %v1493_v55, -inf }
 0x4b5   : > { %v3139_v57 = vpop.f32.mrb[4].mxu1 }
 0x4b6   : > { %v2110_v58 = vpop.f32.mrb[5].mxu1 }
 0x4b9   : > { %v1158_v59 = vpop.f32.mrb[6].mxu1 }
 0x4ba   : > { %v2115_v60 = vpop.f32.mrb[7].mxu1  ;;  %v1162_v61 = vsel %vm922_vm2, %v1158_v59, -inf }
 0x4bb   : > { %1163 = vmax.xlane.f32.xlu1 %v1162_v61 }
 0x4bf   : > { %1498 = vmax.xlane.f32.xlu1 %v1497_v62 }
 0x53e   : > { %v1332_v63 = vpop.xlane.xlu0 %1331 }
 0x53f   : > { %v1333_v2 = vsub.f32 %v1326_v52, %v1332_v63 }
 0x541   : > { %v1334_v3 = vmul.f32 1.442695, %v1333_v2 }
 0x543   : > { %2310 = vpow2.f32 %v1334_v3 }
 0x548   : > { %v1164_v4 = vpop.xlane.xlu1 %1163 }
 0x549   : > { %v1165_v12 = vsub.f32 %v1158_v59, %v1164_v4 }
 0x54b   : > { %v1166_v13 = vmul.f32 1.442695, %v1165_v12 }
 0x54c   : > { %v1499_v5 = vpop.xlane.xlu1 %1498 }
 0x54d   : > { %v2311_v6 = vpop.eup %2310  ;;  %v1500_v7 = vsub.f32 %v1493_v55, %v1499_v5 }
 0x54e   : > { %v1336_v8 = vsel %vm922_vm2, %v2311_v6, 0.0 }
 0x54f   : > { %v1501_v9 = vmul.f32 1.442695, %v1500_v7  ;;  %1337 = vadd.xlane.f32.xlu0 %v1336_v8 }
 0x551   : > { %2312 = vpow2.f32 %v1501_v9 }
 0x552   : > { %2314 = vpow2.f32 %v1166_v13 }
 0x55b   : > { %v2313_v10 = vpop.eup %2312 }
 0x55c   : > { %v1503_v11 = vsel %vm922_vm2, %v2313_v10, 0.0  ;;  %v2315_v14 = vpop.eup %2314 }
 0x55d   : > { %1504 = vadd.xlane.f32.xlu1 %v1503_v11  ;;  %v1168_v15 = vsel %vm922_vm2, %v2315_v14, 0.0 }
 0x565   : > { %1176 = vrot.lane.b32.xlu0 %v3110_v41, %s2664_s26 }
 0x56e   : > { %1343 = vrot.lane.b32.xlu1 %v3110_v41, %s2665_s3  ;;  %s3361_s3 = sld [smem:[#allocation37_spill]] }
 0x592   : > { %1169 = vadd.xlane.f32.xlu1 %v1168_v15 }
 0x5a3   : > { %1510 = vrot.lane.b32.xlu1 %v3110_v41, %s2666_s21  ;;  %s3188_s21 = scalar_lea.hbm %s3361_s3, %s2031_s12 }
 0x5dc   : > { %v1338_v16 = vpop.xlane.xlu0 %1337 }
 0x5dd   : > { %2316 = vrcp.f32 %v1338_v16 }
 0x5e0   : > { %v1177_v17 = vpop.permute.xlu0 %1176 }
 0x5e1   : > { %2117 = vmatpush3.msra.mxu1 %v1177_v17 }
 0x5e2   : > { %2126 = vmatprep.subr.mxu1 %v2662_v1 }
 0x5e7   : > { %v2317_v18 = vpop.eup %2316 }
 0x5e8   : > { %v1340_v19 = vmul.f32 %v2317_v18, %v2311_v6 }
 0x5ea   : > { %2016 = vst.msk [vmem:[%s3126_s30 + $0x10] sm:$0xff] %vm922_vm2, %v1340_v19  ;;  %v1505_v20 = vpop.xlane.xlu1 %1504 }
 0x5eb   : > { %2318 = vrcp.f32 %v1505_v20 }
 0x5ee   : > { %v1344_v23 = vpop.permute.xlu1 %1343 }
 0x5f5   : > { %v2319_v21 = vpop.eup %2318 }
 0x5f6   : > { %v1507_v22 = vmul.f32 %v2319_v21, %v2313_v10 }
 0x5f8   : > { %2020 = vst.msk [vmem:[%s3126_s30 + $0x18] sm:$0xff] %vm922_vm2, %v1507_v22 }
 0x61f   : > { %v1170_v24 = vpop.xlane.xlu1 %1169 }
 0x620   : > { %2320 = vrcp.f32 %v1170_v24 }
 0x623   : > { %v1511_v27 = vpop.permute.xlu1 %1510 }
 0x62a   : > { %v2321_v25 = vpop.eup %2320 }
 0x62b   : > { %v1172_v26 = vmul.f32 %v2321_v25, %v2315_v14 }
 0x62d   : > { %2012 = vst.msk [vmem:[%s3126_s30 + $0x8] sm:$0xff] %vm922_vm2, %v1172_v26  ;;  %2119 = vmatmul.mubr.msk.f32.vlgmr.msra.gmra.mrb[8].mxu1 %vm922_vm2, %v1172_v26 }
 0x62e   : > { %2127 = vmatpush3.msra.mxu1 %v1344_v23  ;;  %2128 = vmatprep.mubr.msk.f32.mxu1 %vm2663_vm1, %v2662_v1 }
 0x62f   : > { %2136 = vmatprep.subr.mxu1 %v2662_v1 }
 0x631   : > { %2129 = vmatmul.mubr.msk.f32.vlgmr.msra.gmra.mrb[10].mxu1 %vm922_vm2, %v1340_v19 }
 0x632   : > { %2137 = vmatpush3.msra.mxu1 %v1511_v27  ;;  %2138 = vmatprep.mubr.msk.f32.mxu1 %vm2663_vm1, %v2662_v1  ;;  %v1607_v1 = vld [vmem:[%s3358_s15 + $0x18] sm:$0xff] }
 0x633   : > { %v2174_v32 = vpack.c.bf16 %v1607_v1, %v1606_v31 }
 0x635   : > { %2139 = vmatmul.mubr.msk.f32.vlgmr.msra.gmra.mrb[12].mxu1 %vm922_vm2, %v1507_v22  ;;  %2175 = vmatpush3.bf16.msra.mxu0 %v2174_v32 }
 0x700   : > { %v1248_v33 = vpop.f32.mrb[8].mxu1 }
 0x701   : > { %1587 = vrot.lane.b32.xlu0 %v1248_v33, %s2667_s17  ;;  %v2120_v34 = vpop.f32.mrb[9].mxu1 }
 0x704   : > { %v1415_v35 = vpop.f32.mrb[10].mxu1 }
 0x705   : > { %1591 = vrot.lane.b32.xlu1 %v1415_v35, %s2668_s19  ;;  %v2130_v0 = vpop.f32.mrb[11].mxu1 }
 0x708   : > { %v1582_v36 = vpop.f32.mrb[12].mxu1 }
 0x709   : > { %1595 = vrot.lane.b32.xlu0 %v1582_v36, %s2669_s27  ;;  %v2140_v37 = vpop.f32.mrb[13].mxu1 }
 0x773   : > { %v1588_v38 = vpop.permute.xlu0 %1587 }
 0x774   : > { %v1598_v40 = vsel %vm922_vm2, %v3139_v57, %v1588_v38 }
 0x777   : > { %v1592_v39 = vpop.permute.xlu1 %1591 }
 0x778   : > { %v1600_v41 = vsel %vm1599_vm3, %v1598_v40, %v1592_v39 }
 0x77b   : > { %v1596_v42 = vpop.permute.xlu0 %1595 }
 0x77c   : > { %v1602_v43 = vsel %vm1601_vm4, %v1600_v41, %v1596_v42 }
 0x77d   : > { %2150 = vmatmul.mubr.msk.f32.vlgmr.msra.gmra.mrb[8].mxu0 %vm664_vm0, %v1602_v43 }
 0x77e   : > { %2537 = shalt.err (!%p2534_p11)
}
 0x77f   : > { %s2538_s30 = scalar_lea.hbm %s3188_s21, 512  ;;  %s2542_s28 = scalar_lea.hbm %s3361_s3, 1024 }
 0x780   : > { %p2539_p5 = scmp.ne.s32.totalorder %s3188_s21, %s2538_s30  ;;  %p2543_p0 = scmp.lt.u32.totalorder %s3188_s21, %s3361_s3 }
 0x781   : > { %p2544_p4 = scmp.lt.u32.totalorder %s2542_s28, %s2538_s30  ;;  %p2546_p13 = scmp.lt.u32.totalorder %s2538_s30, %s3188_s21 }
 0x782   : > { %p2540_p3 = pnand %p2539_p5, %p3362_p2 }
 0x783   : > { %p2545_p10 = por %p2544_p4, %p2543_p0 }
 0x784   : > { %p2541_p6 = pneg %p2540_p3 }
 0x785   : > { %p2547_p1 = por %p2546_p13, %p2545_p10 }
 0x787   : > { %p2548_p12 = pnand %p2547_p1, %p2541_p6 }
 0x789   : > { %2551 = shalt.err (!%p2548_p12)
}
 0x78a   : > { %s2671_s12 = smov 128   ;;  %v1603_v44 = vld [vmem:[#allocation2] sm:$0xff]  ;;  %s3363_s29 = sld [smem:[#allocation36_spill]] }
 0x78b   : > { %2198 = dma.vmem_to_hbm [thread:$0]  (%p3362_p2), %s3191_s16, 512, %s3188_s21, %s1697_s9, %s2671_s12, %s2671_s12, %s2667_s17  }
 0x78c   : > { %s2028_s24 = sshll.u32 %s3359_s11, 7  ;;  %s646_s13 = scalar_lea.vmem [#allocation16], %s3040_s10 }
 0x78d   : > { %s1733_s1 = sshll.u32 %s646_s13, 4  ;;  %s3364_s7 = sld [smem:[#allocation38_spill]]  ;;  %s3229_s1 = int_to_ptr.vmem [resolvable:$true] %s1733_s1 }
 0x78e   : > { %s1702_s21 = scalar_lea.sflag [#allocation17], %s3037_s25  ;;  %s2552_s16 = scalar_lea.vmem %s3229_s1, 128 }
 0x78f   : > { %p2553_p8 = scmp.ne.s32.totalorder %s3229_s1, %s2552_s16  ;;  %s2672_s10 = smov [#allocation16]  }
 0x790   : > { %v2023_v48 = vld [vmem:[%s3363_s29] ss:$0 sm:$0xff]  ;;  %s2556_s11 = sshll.u32 %s2672_s10, 4  ;;  %s2557_s11 = int_to_ptr.vmem [resolvable:$false] %s2556_s11 }
 0x791   : > { %p2554_p9 = pnand %p2553_p8, %p3362_p2  ;;  %s2558_s9 = scalar_lea.vmem %s2557_s11, 256 }
 0x792   : > { %p2559_p11 = scmp.lt.s32.totalorder %s3229_s1, %s2557_s11  ;;  %p2560_p5 = scmp.lt.s32.totalorder %s2558_s9, %s2552_s16 }
 0x793   : > { %s3227_s17 = scalar_lea.hbm %s3364_s7, %s2028_s24  ;;  %p2555_p7 = pneg %p2554_p9 }
 0x794   : > { %p2561_p3 = por %p2560_p5, %p2559_p11 }
 0x796   : > { %p2562_p6 = pnand %p2561_p3, %p2555_p7 }
 0x850   : > { %v1677_v45 = vpop.f32.mrb[8].mxu0 }
 0x851   : > { %v1681_v46 = vadd.f32 %v1677_v45, %v1603_v44  ;;  %v2151_v47 = vpop.f32.mrb[9].mxu0 }
 0x853   : > { %1682 = vst.msk [vmem:[#allocation2] sm:$0xff] %vm664_vm0, %v1681_v46 }
 0x85a   : > { %v1686_v49 = vld [vmem:[#allocation2] sm:$0xff] }
 0x85b   : > { %v1694_v50 = vadd.f32 %v2023_v48, %v1686_v49 }
 0x85d   : > { %1695 = vst.msk [vmem:[%s646_s13] sm:$0xff] %vm664_vm0, %v1694_v50 }
 0x85e   : > { %2565 = shalt.err (!%p2562_p6)
}
 0x85f   : > { %s2566_s25 = scalar_lea.hbm %s3227_s17, 128  ;;  %s2570_s27 = scalar_lea.hbm %s3364_s7, 256 }
 0x860   : > { %p2567_p0 = scmp.ne.s32.totalorder %s3227_s17, %s2566_s25  ;;  %p2571_p13 = scmp.lt.u32.totalorder %s3227_s17, %s3364_s7 }
 0x861   : > { %p2572_p1 = scmp.lt.u32.totalorder %s2570_s27, %s2566_s25  ;;  %p2574_p8 = scmp.lt.u32.totalorder %s2566_s25, %s3227_s17 }
 0x862   : > { %p2568_p4 = pnand %p2567_p0, %p3362_p2 }
 0x863   : > { %p2573_p12 = por %p2572_p1, %p2571_p13 }
 0x864   : > { %p2569_p10 = pneg %p2568_p4 }
 0x865   : > { %p2575_p9 = por %p2574_p8, %p2573_p12 }
 0x867   : > { %p2576_p7 = pnand %p2575_p9, %p2569_p10 }
 0x869   : > { %2579 = shalt.err (!%p2576_p7)
}
 0x86a   : > { %2199 = dma.vmem_to_hbm [thread:$0]  (%p3362_p2), %s3229_s1, 128, %s3227_s17, %s1702_s21  }
 0x86b PF: > { %s3365_s26 = sld [smem:[#allocation24_spill]]  ;;  %s3366_s29 = sld [smem:[#allocation31_spill]] }
 0x86c   : > { %s3367_s24 = sld [smem:[#allocation27_spill]] }
 0x871   : > { %s1745_s13 = sand.u32 1, %s3365_s26   ;;  %p3368_p11 = scmp.ne.s32.totalorder %s3366_s29, 0 }
 0x872   : > { %p3369_p5 = scmp.ge.s32.totalorder %s3367_s24, 2  ;;  %s1746_s30 = scalar_lea.sflag [#allocation5], %s1745_s13 }
 0x874   : > { %p2226_p3 = pnand %p3369_p5, %p3368_p11 }
 0x876   : > { %2621 = dma.done.wait (!%p2226_p3), %s1746_s30, 512  }
 0x877   : > { %2623 = vsyncadd (!%p2226_p3), %s1746_s30, 4294966784  ;;  %s1755_s14 = scalar_lea.sflag [#allocation17], %s1745_s13 }
 0x878   : > { %2625 = dma.done.wait (!%p2226_p3), %s1755_s14, 128  }
 0x879   : > { %2627 = vsyncadd (!%p2226_p3), %s1755_s14, 4294967168  ;;  %s37_s26 = sadd.s32 1, %s3367_s24   ;;  %s3370_s20 = sld [smem:[#allocation30_spill]] }
 0x87a   : > { %p34_p6 = scmp.ge.s32.totalorder %s37_s26, 4   ;;  %s3371_s24 = sld [smem:[#allocation26_spill]] }
 0x87b   : > { %s3372_s25 = sld [smem:[#allocation28_spill]]  ;;  %s3373_s21 = smov %s2634_s22 }
 0x87c   : > { %s3374_s22 = smov %s2638_s23  ;;  %36 = sbr.rel (!%p34_p6) target bundleno = 20 (0x14), region = 190 }
 0x87f   : > { %s3375_s23 = smov %s3370_s20 }
 0x883   :  { %1760 = vsyncpa [#allocation4], 1 }
 0x884   :  { %1762 = vsyncpa [#allocation4 + $0x1], 1 }
 0x885   :  { %1763 = vsyncpa [#allocation7], 1 }
 0x886   :  { %1765 = vsyncpa [#allocation7 + $0x1], 1 }
 0x887   :  { %1766 = vsyncpa [#allocation10], 1 }
 0x888   :  { %1767 = vsyncpa [#allocation13], 1 }
 0x889   :  { %1768 = vsyncpa [#allocation5], 1 }
 0x88a   :  { %1770 = vsyncpa [#allocation5 + $0x1], 1 }
 0x88b   :  { %1771 = vsyncpa [#allocation17], 1 }
 0x88c   :  { %1773 = vsyncpa [#allocation17 + $0x1], 1 }

</bundles_post_ra>
